<compile_context>
chip_gen: v7x
topology: tpu7x:2x2x1
jax: 0.10.0
libtpu: 0.0.40
codegen_flags: <defaults>
</compile_context>

<pallas_src>
import jax
import jax.numpy as jnp
from jax.experimental import pallas as pl
from jax.experimental.pallas import tpu as pltpu


def _fused_conv_kernel(x_ref, w1_ref, b1_ref, w2_ref, b2_ref, o_ref):
    # x_ref : (1, 11, tm)   pixels on the lane axis
    # w1_ref: (24, 11)      conv1 weight  (C_out1, C_in1)
    # b1_ref: (24, 1)
    # w2_ref: (81, 24)      conv2 weight restricted to the 24 real input channels
    # b2_ref: (81, 1)
    # o_ref : (1, 81, tm)
    x = x_ref[0]                                                      # (11, tm)
    t = jnp.dot(w1_ref[...], x, preferred_element_type=jnp.float32)   # (24, tm)
    t = jnp.maximum(t + b1_ref[...], 0.0)
    y = jnp.dot(w2_ref[...], t, preferred_element_type=jnp.float32)   # (81, tm)
    y = jnp.maximum(y + b2_ref[...], 0.0)
    o_ref[0] = y.astype(o_ref.dtype)


def fused_double_conv(x_flat, w1, b1, w2, b2, *, tm=2048):
    """relu(w2 @ relu(w1 @ x + b1) + b2) over flattened pixels.

    x_flat: (N, C_in, M) float32, pixels on the last (lane) axis.
    Returns (N, C_out, M) float32.
    """
    n, c_in, m = x_flat.shape
    c_mid = w1.shape[0]
    c_out = w2.shape[0]

    # Lane-dense pixel tile (multiple of 128). Pallas masks the ragged last
    # block, so no explicit pad of M / slice of the output is needed.
    tm = min(tm, pl.cdiv(m, 128) * 128)
    grid = (n, pl.cdiv(m, tm))

    return pl.pallas_call(
        _fused_conv_kernel,
        out_shape=jax.ShapeDtypeStruct((n, c_out, m), jnp.float32),
        grid_spec=pltpu.PrefetchScalarGridSpec(
            num_scalar_prefetch=0,
            grid=grid,
            in_specs=[
                pl.BlockSpec((1, c_in, tm), lambda b, i: (b, 0, i)),   # pixel tile
                pl.BlockSpec((c_mid, c_in), lambda b, i: (0, 0)),      # w1 (whole)
                pl.BlockSpec((c_mid, 1), lambda b, i: (0, 0)),         # b1
                pl.BlockSpec((c_out, c_mid), lambda b, i: (0, 0)),     # w2 (whole)
                pl.BlockSpec((c_out, 1), lambda b, i: (0, 0)),         # b2
            ],
            out_specs=pl.BlockSpec((1, c_out, tm), lambda b, i: (b, 0, i)),
        ),
        compiler_params=pltpu.CompilerParams(
            dimension_semantics=("parallel", "parallel")),
    )(x_flat, w1, b1.reshape(c_mid, 1), w2, b2.reshape(c_out, 1))


def model_forward(x_nchw, params):
    """x: (N, 11, H, W) float32 -> (N, 81, H+4, W+4) float32."""
    w1, b1, w2, b2 = params            # (24, 11), (24,), (81, 28), (81,)
    n, c, h, w = x_nchw.shape

    # conv1 padding=1: spatial zero pad; stays NCHW so flattening is a pure reshape.
    xp = jnp.pad(x_nchw, ((0, 0), (0, 0), (1, 1), (1, 1)))
    hp, wp = h + 2, w + 2
    x_flat = xp.reshape(n, c, hp * wp)

    # Use only the 24 real input channels of conv2 (== zero-padding activations to 28).
    w2_eff = w2[:, :24]

    interior = fused_double_conv(x_flat, w1, b1, w2_eff, b2)   # (N, 81, hp*wp)
    interior = interior.reshape(n, 81, hp, wp)

    # conv2 padding=1: its zero-padded outer ring gives the per-channel constant relu(b2).
    border = jnp.maximum(b2, 0.0)
    out = jnp.broadcast_to(border[None, :, None, None], (n, 81, hp + 2, wp + 2))
    out = out.at[:, :, 1:-1, 1:-1].set(interior)
    return out


def reference_forward(x, params):
    """Pure-JAX reference of the (repaired) module semantics."""
    w1, b1, w2, b2 = params
    xp = jnp.pad(x, ((0, 0), (0, 0), (1, 1), (1, 1)))
    y1 = jnp.einsum('oc,nchw->nohw', w1, xp) + b1[None, :, None, None]
    y1 = jnp.maximum(y1, 0.0)
    y1p = jnp.pad(y1, ((0, 0), (0, 0), (1, 1), (1, 1)))
    y2 = jnp.einsum('oc,nchw->nohw', w2[:, :24], y1p) + b2[None, :, None, None]
    return jnp.maximum(y2, 0.0)


def init_params(key):
    k1, k2, k3, k4 = jax.random.split(key, 4)
    # Conv2d(11, 24, 1): weight (24, 11, 1, 1) -> (24, 11)
    s1 = 1.0 / jnp.sqrt(11.0)
    w1 = jax.random.uniform(k1, (24, 11), jnp.float32, -s1, s1)
    b1 = jax.random.uniform(k2, (24,), jnp.float32, -s1, s1)
    # Conv2d(28, 81, 1): weight (81, 28, 1, 1) -> (81, 28)
    s2 = 1.0 / jnp.sqrt(28.0)
    w2 = jax.random.uniform(k3, (81, 28), jnp.float32, -s2, s2)
    b2 = jax.random.uniform(k4, (81,), jnp.float32, -s2, s2)
    return (w1, b1, w2, b2)


if __name__ == "__main__":
    key = jax.random.PRNGKey(0)
    pkey, xkey = jax.random.split(key)
    params = init_params(pkey)

    # Small spatial size consistent with the module (channels must be 11).
    x = jax.random.normal(xkey, (1, 11, 16, 16), jnp.float32)

    out = jax.jit(model_forward)(x, params)
    out = jax.block_until_ready(out)

    assert out.shape == (1, 81, 20, 20), out.shape
    assert out.dtype == jnp.float32
    assert bool(jnp.all(out >= 0.0))  # relu output

    ref = reference_forward(x, params)
    max_err = float(jnp.max(jnp.abs(out - ref)))
    assert max_err < 1e-2, max_err

    print("KERNEL_OK")
</pallas_src>

<mosaic_0001>
module attributes {stable_mosaic.version = 11 : i64} {
  func.func @_fused_conv_kernel(%arg0: i32, %arg1: i32, %arg2: memref<1x11x384xf32, #tpu.memory_space<vmem>>, %arg3: memref<24x11xf32, #tpu.memory_space<vmem>>, %arg4: memref<24x1xf32, #tpu.memory_space<vmem>>, %arg5: memref<81x24xf32, #tpu.memory_space<vmem>>, %arg6: memref<81x1xf32, #tpu.memory_space<vmem>>, %arg7: memref<1x81x384xf32, #tpu.memory_space<vmem>>) attributes {dimension_semantics = [#tpu.dimension_semantics<parallel>, #tpu.dimension_semantics<parallel>], iteration_bounds = array<i64: 1, 1>, scalar_prefetch = 0 : i64, scratch_operands = 0 : i64, tpu.core_type = #tpu.core_type<tc>, window_params = [{transform_indices = @transform_0, window_bounds = array<i64: 1, 11, 384>}, {pipeline_mode = #tpu.pipeline_mode<synchronous>, transform_indices = @transform_1, window_bounds = array<i64: 24, 11>}, {pipeline_mode = #tpu.pipeline_mode<synchronous>, transform_indices = @transform_2, window_bounds = array<i64: 24, 1>}, {pipeline_mode = #tpu.pipeline_mode<synchronous>, transform_indices = @transform_3, window_bounds = array<i64: 81, 24>}, {pipeline_mode = #tpu.pipeline_mode<synchronous>, transform_indices = @transform_4, window_bounds = array<i64: 81, 1>}, {transform_indices = @transform_5, window_bounds = array<i64: 1, 81, 384>}]} {
    %c0 = arith.constant 0 : index
    %c0_0 = arith.constant 0 : index
    %c0_1 = arith.constant 0 : index
    %0 = vector.load %arg2[%c0, %c0_0, %c0_1] : memref<1x11x384xf32, #tpu.memory_space<vmem>>, vector<1x11x384xf32>
    %1 = vector.shape_cast %0 : vector<1x11x384xf32> to vector<11x384xf32>
    %c0_2 = arith.constant 0 : index
    %c0_3 = arith.constant 0 : index
    %2 = vector.load %arg3[%c0_2, %c0_3] : memref<24x11xf32, #tpu.memory_space<vmem>>, vector<24x11xf32>
    %cst = arith.constant dense<0.000000e+00> : vector<24x384xf32>
    %3 = tpu.matmul %2, %1, %cst {dimension_numbers = #tpu.dot_dimension_numbers<[1], [0], [0], [1], [0, 0, 1, 1], [], []>} : vector<24x11xf32>, vector<11x384xf32>, vector<24x384xf32> -> vector<24x384xf32>
    %c0_4 = arith.constant 0 : index
    %c0_5 = arith.constant 0 : index
    %4 = vector.load %arg4[%c0_4, %c0_5] : memref<24x1xf32, #tpu.memory_space<vmem>>, vector<24x1xf32>
    %5 = vector.broadcast %4 : vector<24x1xf32> to vector<24x384xf32>
    %6 = arith.addf %3, %5 : vector<24x384xf32>
    %cst_6 = arith.constant 0.000000e+00 : f32
    %7 = vector.broadcast %cst_6 : f32 to vector<24x384xf32>
    %8 = arith.maximumf %6, %7 : vector<24x384xf32>
    %c0_7 = arith.constant 0 : index
    %c0_8 = arith.constant 0 : index
    %9 = vector.load %arg5[%c0_7, %c0_8] : memref<81x24xf32, #tpu.memory_space<vmem>>, vector<81x24xf32>
    %cst_9 = arith.constant dense<0.000000e+00> : vector<81x384xf32>
    %10 = tpu.matmul %9, %8, %cst_9 {dimension_numbers = #tpu.dot_dimension_numbers<[1], [0], [0], [1], [0, 0, 1, 1], [], []>} : vector<81x24xf32>, vector<24x384xf32>, vector<81x384xf32> -> vector<81x384xf32>
    %c0_10 = arith.constant 0 : index
    %c0_11 = arith.constant 0 : index
    %11 = vector.load %arg6[%c0_10, %c0_11] : memref<81x1xf32, #tpu.memory_space<vmem>>, vector<81x1xf32>
    %12 = vector.broadcast %11 : vector<81x1xf32> to vector<81x384xf32>
    %13 = arith.addf %10, %12 : vector<81x384xf32>
    %cst_12 = arith.constant 0.000000e+00 : f32
    %14 = vector.broadcast %cst_12 : f32 to vector<81x384xf32>
    %15 = arith.maximumf %13, %14 : vector<81x384xf32>
    %c0_13 = arith.constant 0 : index
    %c0_14 = arith.constant 0 : index
    %c0_15 = arith.constant 0 : index
    %16 = vector.load %arg7[%c0_13, %c0_14, %c0_15] : memref<1x81x384xf32, #tpu.memory_space<vmem>>, vector<1x81x384xf32>
    %17 = vector.shape_cast %16 : vector<1x81x384xf32> to vector<81x384xf32>
    %18 = vector.shape_cast %15 : vector<81x384xf32> to vector<1x81x384xf32>
    tpu.vector_store %arg7[%c0_13, %c0_14, %c0_15], %18 {strides = array<i32>} : memref<1x81x384xf32, #tpu.memory_space<vmem>>, vector<1x81x384xf32>,
    return
  }
  func.func @transform_0(%arg0: i32, %arg1: i32) -> (i32, i32, i32) {
    %c0_i32 = arith.constant 0 : i32
    %c0_i32_0 = arith.constant 0 : i32
    return %arg0, %c0_i32, %arg1 : i32, i32, i32
  }
  func.func @transform_1(%arg0: i32, %arg1: i32) -> (i32, i32) {
    %c0_i32 = arith.constant 0 : i32
    %c0_i32_0 = arith.constant 0 : i32
    %c0_i32_1 = arith.constant 0 : i32
    return %c0_i32, %c0_i32_0 : i32, i32
  }
  func.func @transform_2(%arg0: i32, %arg1: i32) -> (i32, i32) {
    %c0_i32 = arith.constant 0 : i32
    %c0_i32_0 = arith.constant 0 : i32
    %c0_i32_1 = arith.constant 0 : i32
    return %c0_i32, %c0_i32_0 : i32, i32
  }
  func.func @transform_3(%arg0: i32, %arg1: i32) -> (i32, i32) {
    %c0_i32 = arith.constant 0 : i32
    %c0_i32_0 = arith.constant 0 : i32
    %c0_i32_1 = arith.constant 0 : i32
    return %c0_i32, %c0_i32_0 : i32, i32
  }
  func.func @transform_4(%arg0: i32, %arg1: i32) -> (i32, i32) {
    %c0_i32 = arith.constant 0 : i32
    %c0_i32_0 = arith.constant 0 : i32
    %c0_i32_1 = arith.constant 0 : i32
    return %c0_i32, %c0_i32_0 : i32, i32
  }
  func.func @transform_5(%arg0: i32, %arg1: i32) -> (i32, i32, i32) {
    %c0_i32 = arith.constant 0 : i32
    %c0_i32_0 = arith.constant 0 : i32
    return %arg0, %c0_i32, %arg1 : i32, i32, i32
  }
}

</mosaic_0001>

<bundles_post_ra>
// kernel: model_forward.1
= control target key start
LH: loop header
LB: loop body
LE: loop exit
PB: predicated region body
PF: predicated region fallthrough
CT: control target
= control target key end

     0   :  { %vm57_vm0 = vcmask 1042432   ;;  %v797_v0 = vmov 0.0|0.0   ;;  %vm798_vm1 = vmmov 1   ;;  %v799_v4 = vmov 0.0   ;;  %s1114_s0 = inlined_call_operand.vmem [shape: f32[1,11,324], index: 0, kind: input, shape index: {}]   ;;  %s1115_s2 = inlined_call_operand.vmem [shape: f32[24,1], index: 2, kind: input, shape index: {}]   ;;  %s1116_s1 = inlined_call_operand.vmem [shape: f32[24,11], index: 1, kind: input, shape index: {}]   ;;  %s1117_s4 = inlined_call_operand.vmem [shape: f32[81,1], index: 4, kind: input, shape index: {}]   ;;  %s1118_s3 = inlined_call_operand.vmem [shape: f32[81,24], index: 3, kind: input, shape index: {}]   ;;  %s1119_s5 = inlined_call_operand.vmem [shape: f32[1,81,324], index: 5, kind: output, shape index: {}]  }
   0x1   :  { %779 = vmatprep.subr.bf16.mxu1 %v797_v0  ;;  %v21_v1 = vld [vmem:[%s1114_s0 + $0x8] sm:$0xff]  ;;  %v24_v2 = vld [vmem:[%s1114_s0 + $0x20] sm:$0x7]  ;;  %vm838_vm2 = vmpackc.low %vm57_vm0, %vm798_vm1  ;;  %131 = vmatprep.mubr.f32.mxu0 %v799_v4  ;;  %vm800_vm3 = vmmov 0   ;;  %v801_v9 = vmov 0   ;;  %vm47_vm4 = vcmask 89088  }
   0x2   :  { %v773_v5 = vpack.c.bf16 %v24_v2, %v21_v1  ;;  %v22_v6 = vld [vmem:[%s1114_s0 + $0x10] sm:$0xff]  ;;  %v25_v7 = vld [vmem:[%s1114_s0 + $0x28] sm:$0x7]  ;;  %v20_v8 = vld [vmem:[%s1114_s0] sm:$0xff]  ;;  %725 = vmatprep.mubr.msk.f32.mxu1 %vm800_vm3, %v799_v4  ;;  %795 = vset.pattern.permute.xlu0 %v801_v9  ;;  %vm316_vm5 = vcmask 195584  }
   0x3   :  { %v780_v10 = vpack.c.bf16 %v25_v7, %v22_v6  ;;  %v23_v11 = vld [vmem:[%s1114_s0 + $0x18] sm:$0x7]  ;;  %796 = vset.pattern.permute.xlu1 %v801_v9  ;;  %v29_v13 = vld [vmem:[%s1115_s2] sm:$0xff]  ;;  %v31_v15 = vld [vmem:[%s1115_s2 + $0x10] sm:$0xff] }
   0x4   :  { %775 = vmatprep.subr.msk.bf16.mxu0 %vm838_vm2, %v773_v5  ;;  %v776_v12 = vpack.c.bf16 %v23_v11, %v20_v8  ;;  %v26_v14 = vld [vmem:[%s1116_s1] sm:$0xff]  ;;  %34 = vperm.xlu0 %795, %v29_v13   ;;  %v30_v16 = vld [vmem:[%s1115_s2 + $0x8] sm:$0xff]  ;;  %v252_v20 = vld [vmem:[%s1117_s4 + $0x10] sm:$0xff] }
   0x5   :  { %782 = vmatpush3.bf16.msk.msra.mxu1 %vm838_vm2, %v780_v10  ;;  %44 = vperm.xlu1 %796, %v31_v15   ;;  %v250_v17 = vld [vmem:[%s1117_s4] sm:$0xff]  ;;  %v27_v18 = vld [vmem:[%s1116_s1 + $0x8] sm:$0xff]  ;;  %v28_v21 = vld [vmem:[%s1116_s1 + $0x10] sm:$0xff] }
   0x6   :  { %778 = vmatpush1.bf16.msk.msra.mxu0 %vm838_vm2, %v776_v12  ;;  %787 = vmatprep.subr.bf16.mxu1 %v797_v0  ;;  %v251_v19 = vld [vmem:[%s1117_s4 + $0x8] sm:$0xff]  ;;  %v253_v22 = vld [vmem:[%s1117_s4 + $0x18] sm:$0xff]  ;;  %v254_v23 = vld [vmem:[%s1117_s4 + $0x20] sm:$0xff] }
   0x7   :  { %v255_v24 = vld [vmem:[%s1117_s4 + $0x28] sm:$0xff]  ;;  %v256_v25 = vld [vmem:[%s1117_s4 + $0x30] sm:$0xff]  ;;  %v257_v26 = vld [vmem:[%s1117_s4 + $0x38] sm:$0xff] }
   0x8   :  { %726 = vmatmul.mubr.msk.f32.vlgmr.msra.gmra.mrb[0].mxu1 %vm47_vm4, %v26_v14  ;;  %39 = vperm.xlu0 %795, %v30_v16   ;;  %v258_v27 = vld [vmem:[%s1117_s4 + $0x40] sm:$0xff]  ;;  %v259_v28 = vld [vmem:[%s1117_s4 + $0x48] sm:$0xff]  ;;  %v260_v29 = vld [vmem:[%s1117_s4 + $0x50] sm:$0x1] }
   0x9   :  { %673 = vmatmul.mubr.msk.f32.vlgmr.msra.gmra.mrb[0].mxu0 %vm47_vm4, %v26_v14  ;;  %728 = vmatprep.mubr.msk.f32.mxu1 %vm800_vm3, %v799_v4  ;;  %v239_v1 = vld [vmem:[%s1118_s3] sm:$0xff]  ;;  %v240_v3 = vld [vmem:[%s1118_s3 + $0x8] sm:$0xff]  ;;  %v241_v5 = vld [vmem:[%s1118_s3 + $0x10] sm:$0xff] }
   0xa   :  { %137 = vmatprep.mubr.f32.mxu0 %v799_v4  ;;  %263 = vperm.xlu1 %796, %v250_v17   ;;  %v242_v6 = vld [vmem:[%s1118_s3 + $0x18] sm:$0xff]  ;;  %v243_v7 = vld [vmem:[%s1118_s3 + $0x20] sm:$0xff]  ;;  %v244_v8 = vld [vmem:[%s1118_s3 + $0x28] sm:$0xff] }
   0xb   :  { %v245_v9 = vld [vmem:[%s1118_s3 + $0x30] sm:$0xff]  ;;  %v246_v10 = vld [vmem:[%s1118_s3 + $0x38] sm:$0xff]  ;;  %v247_v11 = vld [vmem:[%s1118_s3 + $0x40] sm:$0xff] }
   0xc   :  { %729 = vmatmul.mubr.msk.f32.gmra.mrb[2].mxu1 %vm47_vm4, %v27_v18  ;;  %268 = vperm.xlu0 %795, %v251_v19   ;;  %v248_v12 = vld [vmem:[%s1118_s3 + $0x48] sm:$0xff]  ;;  %v249_v13 = vld [vmem:[%s1118_s3 + $0x50] sm:$0x1] }
   0xd   :  { %674 = vmatmul.mubr.msk.f32.gmra.mrb[2].mxu0 %vm47_vm4, %v27_v18  ;;  %731 = vmatprep.mubr.msk.f32.mxu1 %vm800_vm3, %v799_v4 }
   0xe   :  { %143 = vmatprep.mubr.f32.mxu0 %v799_v4  ;;  %273 = vperm.xlu1 %796, %v252_v20  }
  0x10   :  { %732 = vmatmul.mubr.msk.f32.gmra.mrb[4].mxu1 %vm47_vm4, %v28_v21  ;;  %278 = vperm.xlu0 %795, %v253_v22  }
  0x11   :  { %675 = vmatmul.mubr.msk.f32.gmra.mrb[4].mxu0 %vm47_vm4, %v28_v21  ;;  %740 = vmatprep.mubr.msk.f32.mxu1 %vm800_vm3, %v799_v4 }
  0x12   :  { %414 = vmatprep.mubr.f32.mxu0 %v799_v4  ;;  %283 = vperm.xlu1 %796, %v254_v23  }
  0x14   :  { %288 = vperm.xlu0 %795, %v255_v24  }
  0x16   :  { %293 = vperm.xlu1 %796, %v256_v25  }
  0x18   :  { %298 = vperm.xlu0 %795, %v257_v26  }
  0x1a   :  { %303 = vperm.xlu1 %796, %v258_v27  }
  0x1c   :  { %308 = vperm.xlu0 %795, %v259_v28  }
  0x1e   :  { %313 = vperm.xlu1 %796, %v260_v29  }
  0x83   :  { %v35_v30 = vpop.permute.xlu0 %34 }
  0x84   :  { %v45_v48 = vpop.permute.xlu1 %44 }
  0x87   :  { %v40_v36 = vpop.permute.xlu0 %39 }
  0x89   :  { %v264_v14 = vpop.permute.xlu1 %263 }
  0x8b   :  { %v269_v18 = vpop.permute.xlu0 %268 }
  0x8d   :  { %v274_v27 = vpop.permute.xlu1 %273 }
  0xdb   :  { %v216_v31 = vpop.f32.mrb[0].mxu1 }
  0xdc   :  { %v133_v32 = vpop.f32.mrb[0].mxu0  ;;  %v727_v33 = vpop.f32.mrb[1].mxu1  ;;  %v217_v35 = vadd.f32 %v216_v31, %v35_v30 }
  0xdd   :  { %v135_v34 = vpop.f32.mrb[1].mxu0  ;;  %v134_v37 = vadd.f32 %v133_v32, %v35_v30 }
  0xde   :  { %v136_v39 = vadd.f32 %v135_v34, %v35_v30  ;;  %v232_v45 = vmax.f32 %v217_v35, 0.0 }
  0xdf   :  { %v221_v38 = vpop.f32.mrb[2].mxu1  ;;  %v230_v49 = vmax.f32 %v134_v37, 0.0 }
  0xe0   :  { %v222_v40 = vadd.f32 %v221_v38, %v40_v36  ;;  %v139_v41 = vpop.f32.mrb[2].mxu0  ;;  %v730_v42 = vpop.f32.mrb[3].mxu1  ;;  %v231_v52 = vmax.f32 %v136_v39, 0.0 }
  0xe1   :  { %v140_v43 = vadd.f32 %v139_v41, %v40_v36  ;;  %v141_v44 = vpop.f32.mrb[3].mxu0  ;;  %v279_v38 = vpop.permute.xlu0 %278 }
  0xe2   :  { %v235_v46 = vmax.f32 %v222_v40, 0.0  ;;  %v142_v47 = vadd.f32 %v141_v44, %v40_v36 }
  0xe3   :  { %v233_v50 = vmax.f32 %v140_v43, 0.0  ;;  %v226_v51 = vpop.f32.mrb[4].mxu1 }
  0xe4   :  { %v788_v53 = vpack.c.bf16 %v235_v46, %v232_v45  ;;  %v234_v54 = vmax.f32 %v142_v47, 0.0  ;;  %v227_v55 = vadd.f32 %v226_v51, %v45_v48  ;;  %v145_v56 = vpop.f32.mrb[4].mxu0  ;;  %v733_v57 = vpop.f32.mrb[5].mxu1 }
  0xe5   :  { %v785_v58 = vpack.c.bf16 %v233_v50, %v230_v49  ;;  %v147_v59 = vpop.f32.mrb[5].mxu0  ;;  %v146_v63 = vadd.f32 %v145_v56, %v45_v48  ;;  %v284_v49 = vpop.permute.xlu1 %283 }
  0xe6   :  { %v783_v60 = vpack.c.bf16 %v234_v54, %v231_v52  ;;  %v238_v61 = vmax.f32 %v227_v55, 0.0  ;;  %789 = vmatpush3.bf16.msra.mxu1 %v788_v53  ;;  %v148_v62 = vadd.f32 %v147_v59, %v45_v48 }
  0xe7   :  { %738 = vmatprep.subr.mxu1 %v799_v4  ;;  %v236_v2 = vmax.f32 %v146_v63, 0.0 }
  0xe8   :  { %v237_v0 = vmax.f32 %v148_v62, 0.0  ;;  %784 = vmatprep.subr.bf16.mxu0 %v783_v60  ;;  %v289_v60 = vpop.permute.xlu0 %288 }
  0xe9   :  { %786 = vmatpush1.bf16.msra.mxu0 %v785_v58 }
  0xea   :  { %739 = vmatpush3.msra.mxu1 %v238_v61  ;;  %354 = vmatprep.subr.mxu0 %v237_v0 }
  0xeb   :  { %741 = vmatmul.mubr.msk.f32.vlgmr.msra.gmra.mrb[6].mxu1 %vm316_vm5, %v239_v1 }
  0xec   :  { %743 = vmatprep.mubr.msk.f32.mxu1 %vm800_vm3, %v799_v4 }
  0xed   :  { %355 = vmatpush1.msra.mxu0 %v236_v2 }
  0xee   :  { %680 = vmatmul.mubr.msk.f32.vlgmr.msra.gmra.mrb[6].mxu0 %vm316_vm5, %v239_v1 }
  0xef   :  { %744 = vmatmul.mubr.msk.f32.gmra.mrb[8].mxu1 %vm316_vm5, %v240_v3  ;;  %420 = vmatprep.mubr.f32.mxu0 %v799_v4 }
  0xf0   :  { %746 = vmatprep.mubr.msk.f32.mxu1 %vm800_vm3, %v799_v4 }
  0xf2   :  { %681 = vmatmul.mubr.msk.f32.gmra.mrb[8].mxu0 %vm316_vm5, %v240_v3 }
  0xf3   :  { %747 = vmatmul.mubr.msk.f32.gmra.mrb[10].mxu1 %vm316_vm5, %v241_v5  ;;  %426 = vmatprep.mubr.f32.mxu0 %v799_v4 }
  0xf4   :  { %749 = vmatprep.mubr.msk.f32.mxu1 %vm800_vm3, %v799_v4 }
  0xf6   :  { %682 = vmatmul.mubr.msk.f32.gmra.mrb[10].mxu0 %vm316_vm5, %v241_v5 }
  0xf7   :  { %750 = vmatmul.mubr.msk.f32.gmra.mrb[12].mxu1 %vm316_vm5, %v242_v6  ;;  %432 = vmatprep.mubr.f32.mxu0 %v799_v4 }
  0xf8   :  { %752 = vmatprep.mubr.msk.f32.mxu1 %vm800_vm3, %v799_v4 }
  0xfa   :  { %683 = vmatmul.mubr.msk.f32.gmra.mrb[12].mxu0 %vm316_vm5, %v242_v6 }
  0xfb   :  { %753 = vmatmul.mubr.msk.f32.gmra.mrb[14].mxu1 %vm316_vm5, %v243_v7  ;;  %438 = vmatprep.mubr.f32.mxu0 %v799_v4 }
  0xfc   :  { %755 = vmatprep.mubr.msk.f32.mxu1 %vm800_vm3, %v799_v4 }
  0xfe   :  { %684 = vmatmul.mubr.msk.f32.gmra.mrb[14].mxu0 %vm316_vm5, %v243_v7 }
  0xff   :  { %756 = vmatmul.mubr.msk.f32.gmra.mrb[16].mxu1 %vm316_vm5, %v244_v8  ;;  %444 = vmatprep.mubr.f32.mxu0 %v799_v4 }
 0x100   :  { %758 = vmatprep.mubr.msk.f32.mxu1 %vm800_vm3, %v799_v4 }
 0x102   :  { %685 = vmatmul.mubr.msk.f32.gmra.mrb[16].mxu0 %vm316_vm5, %v244_v8  ;;  %v294_v8 = vpop.permute.xlu1 %293 }
 0x103   :  { %759 = vmatmul.mubr.msk.f32.gmra.mrb[18].mxu1 %vm316_vm5, %v245_v9  ;;  %450 = vmatprep.mubr.f32.mxu0 %v799_v4 }
 0x104   :  { %761 = vmatprep.mubr.msk.f32.mxu1 %vm800_vm3, %v799_v4 }
 0x106   :  { %686 = vmatmul.mubr.msk.f32.gmra.mrb[18].mxu0 %vm316_vm5, %v245_v9 }
 0x107   :  { %762 = vmatmul.mubr.msk.f32.gmra.mrb[20].mxu1 %vm316_vm5, %v246_v10  ;;  %456 = vmatprep.mubr.f32.mxu0 %v799_v4 }
 0x108   :  { %764 = vmatprep.mubr.msk.f32.mxu1 %vm800_vm3, %v799_v4 }
 0x10a   :  { %687 = vmatmul.mubr.msk.f32.gmra.mrb[20].mxu0 %vm316_vm5, %v246_v10 }
 0x10b   :  { %765 = vmatmul.mubr.msk.f32.gmra.mrb[22].mxu1 %vm316_vm5, %v247_v11  ;;  %462 = vmatprep.mubr.f32.mxu0 %v799_v4 }
 0x10c   :  { %767 = vmatprep.mubr.msk.f32.mxu1 %vm800_vm3, %v799_v4 }
 0x10e   :  { %688 = vmatmul.mubr.msk.f32.gmra.mrb[22].mxu0 %vm316_vm5, %v247_v11 }
 0x10f   :  { %768 = vmatmul.mubr.msk.f32.gmra.mrb[24].mxu1 %vm316_vm5, %v248_v12  ;;  %468 = vmatprep.mubr.f32.mxu0 %v799_v4 }
 0x110   :  { %770 = vmatprep.mubr.msk.f32.mxu1 %vm800_vm3, %v799_v4 }
 0x112   :  { %689 = vmatmul.mubr.msk.f32.gmra.mrb[24].mxu0 %vm316_vm5, %v248_v12 }
 0x113   :  { %771 = vmatmul.mubr.msk.f32.gmra.mrb[26].mxu1 %vm316_vm5, %v249_v13  ;;  %474 = vmatprep.mubr.f32.mxu0 %v799_v4 }
 0x116   :  { %690 = vmatmul.mubr.msk.f32.gmra.mrb[26].mxu0 %vm316_vm5, %v249_v13 }
 0x1be   :  { %v547_v15 = vpop.f32.mrb[6].mxu1 }
 0x1bf   :  { %v548_v16 = vadd.f32 %v547_v15, %v264_v14  ;;  %v742_v17 = vpop.f32.mrb[7].mxu1 }
 0x1c1   :  { %v603_v19 = vmax.f32 %v548_v16, 0.0  ;;  %v416_v20 = vpop.f32.mrb[6].mxu0 }
 0x1c2   :  { %v417_v21 = vadd.f32 %v416_v20, %v264_v14  ;;  %v418_v22 = vpop.f32.mrb[7].mxu0  ;;  %v552_v23 = vpop.f32.mrb[8].mxu1 }
 0x1c3   :  { %636 = vst [vmem:[%s1119_s5 + $0x10] sm:$0xff] %v603_v19  ;;  %v419_v24 = vadd.f32 %v418_v22, %v264_v14  ;;  %v553_v25 = vadd.f32 %v552_v23, %v269_v18  ;;  %v745_v26 = vpop.f32.mrb[9].mxu1  ;;  %v299_v19 = vpop.permute.xlu0 %298 }
 0x1c4   :  { %v601_v4 = vmax.f32 %v417_v21, 0.0 }
 0x1c5   :  { %v602_v28 = vmax.f32 %v419_v24, 0.0  ;;  %v606_v29 = vmax.f32 %v553_v25, 0.0  ;;  %v422_v30 = vpop.f32.mrb[8].mxu0 }
 0x1c6   :  { %634 = vst [vmem:[%s1119_s5] sm:$0xff] %v601_v4  ;;  %v423_v31 = vadd.f32 %v422_v30, %v269_v18  ;;  %v424_v32 = vpop.f32.mrb[9].mxu0  ;;  %v557_v33 = vpop.f32.mrb[10].mxu1 }
 0x1c7   :  { %635 = vst [vmem:[%s1119_s5 + $0x8] sm:$0xff] %v602_v28  ;;  %639 = vst [vmem:[%s1119_s5 + $0x28] sm:$0xff] %v606_v29  ;;  %v425_v34 = vadd.f32 %v424_v32, %v269_v18  ;;  %v558_v35 = vadd.f32 %v557_v33, %v274_v27  ;;  %v748_v36 = vpop.f32.mrb[11].mxu1  ;;  %v304_v29 = vpop.permute.xlu1 %303 }
 0x1c8   :  { %v604_v37 = vmax.f32 %v423_v31, 0.0 }
 0x1c9   :  { %v605_v39 = vmax.f32 %v425_v34, 0.0  ;;  %v609_v40 = vmax.f32 %v558_v35, 0.0  ;;  %v428_v41 = vpop.f32.mrb[10].mxu0 }
 0x1ca   :  { %637 = vst [vmem:[%s1119_s5 + $0x18] sm:$0xff] %v604_v37  ;;  %v429_v42 = vadd.f32 %v428_v41, %v274_v27  ;;  %v430_v43 = vpop.f32.mrb[11].mxu0  ;;  %v562_v44 = vpop.f32.mrb[12].mxu1 }
 0x1cb   :  { %638 = vst [vmem:[%s1119_s5 + $0x20] sm:$0xff] %v605_v39  ;;  %642 = vst [vmem:[%s1119_s5 + $0x40] sm:$0xff] %v609_v40  ;;  %v431_v45 = vadd.f32 %v430_v43, %v274_v27  ;;  %v563_v46 = vadd.f32 %v562_v44, %v279_v38  ;;  %v751_v47 = vpop.f32.mrb[13].mxu1  ;;  %v309_v40 = vpop.permute.xlu0 %308 }
 0x1cc   :  { %v607_v48 = vmax.f32 %v429_v42, 0.0 }
 0x1cd   :  { %v608_v50 = vmax.f32 %v431_v45, 0.0  ;;  %v612_v51 = vmax.f32 %v563_v46, 0.0  ;;  %v434_v52 = vpop.f32.mrb[12].mxu0 }
 0x1ce   :  { %640 = vst [vmem:[%s1119_s5 + $0x30] sm:$0xff] %v607_v48  ;;  %v435_v53 = vadd.f32 %v434_v52, %v279_v38  ;;  %v436_v54 = vpop.f32.mrb[13].mxu0  ;;  %v567_v55 = vpop.f32.mrb[14].mxu1 }
 0x1cf   :  { %641 = vst [vmem:[%s1119_s5 + $0x38] sm:$0xff] %v608_v50  ;;  %645 = vst [vmem:[%s1119_s5 + $0x58] sm:$0xff] %v612_v51  ;;  %v437_v56 = vadd.f32 %v436_v54, %v279_v38  ;;  %v568_v57 = vadd.f32 %v567_v55, %v284_v49  ;;  %v754_v58 = vpop.f32.mrb[15].mxu1  ;;  %v314_v51 = vpop.permute.xlu1 %313 }
 0x1d0   :  { %v610_v59 = vmax.f32 %v435_v53, 0.0 }
 0x1d1   :  { %v611_v61 = vmax.f32 %v437_v56, 0.0  ;;  %v615_v62 = vmax.f32 %v568_v57, 0.0  ;;  %v440_v63 = vpop.f32.mrb[14].mxu0 }
 0x1d2   :  { %643 = vst [vmem:[%s1119_s5 + $0x48] sm:$0xff] %v610_v59  ;;  %v441_v0 = vadd.f32 %v440_v63, %v284_v49  ;;  %v442_v1 = vpop.f32.mrb[15].mxu0  ;;  %v572_v2 = vpop.f32.mrb[16].mxu1 }
 0x1d3   :  { %644 = vst [vmem:[%s1119_s5 + $0x50] sm:$0xff] %v611_v61  ;;  %648 = vst [vmem:[%s1119_s5 + $0x70] sm:$0xff] %v615_v62  ;;  %v443_v3 = vadd.f32 %v442_v1, %v284_v49  ;;  %v573_v5 = vadd.f32 %v572_v2, %v289_v60  ;;  %v757_v6 = vpop.f32.mrb[17].mxu1 }
 0x1d4   :  { %v613_v7 = vmax.f32 %v441_v0, 0.0 }
 0x1d5   :  { %v614_v9 = vmax.f32 %v443_v3, 0.0  ;;  %v618_v10 = vmax.f32 %v573_v5, 0.0  ;;  %v446_v11 = vpop.f32.mrb[16].mxu0 }
 0x1d6   :  { %646 = vst [vmem:[%s1119_s5 + $0x60] sm:$0xff] %v613_v7  ;;  %v447_v12 = vadd.f32 %v446_v11, %v289_v60  ;;  %v448_v13 = vpop.f32.mrb[17].mxu0  ;;  %v577_v14 = vpop.f32.mrb[18].mxu1 }
 0x1d7   :  { %647 = vst [vmem:[%s1119_s5 + $0x68] sm:$0xff] %v614_v9  ;;  %651 = vst [vmem:[%s1119_s5 + $0x88] sm:$0xff] %v618_v10  ;;  %v449_v15 = vadd.f32 %v448_v13, %v289_v60  ;;  %v578_v16 = vadd.f32 %v577_v14, %v294_v8  ;;  %v760_v17 = vpop.f32.mrb[19].mxu1 }
 0x1d8   :  { %v616_v18 = vmax.f32 %v447_v12, 0.0 }
 0x1d9   :  { %v617_v20 = vmax.f32 %v449_v15, 0.0  ;;  %v621_v21 = vmax.f32 %v578_v16, 0.0  ;;  %v452_v22 = vpop.f32.mrb[18].mxu0 }
 0x1da   :  { %649 = vst [vmem:[%s1119_s5 + $0x78] sm:$0xff] %v616_v18  ;;  %v453_v23 = vadd.f32 %v452_v22, %v294_v8  ;;  %v454_v24 = vpop.f32.mrb[19].mxu0  ;;  %v582_v25 = vpop.f32.mrb[20].mxu1 }
 0x1db   :  { %650 = vst [vmem:[%s1119_s5 + $0x80] sm:$0xff] %v617_v20  ;;  %654 = vst [vmem:[%s1119_s5 + $0xa0] sm:$0xff] %v621_v21  ;;  %v455_v26 = vadd.f32 %v454_v24, %v294_v8  ;;  %v583_v4 = vadd.f32 %v582_v25, %v299_v19  ;;  %v763_v27 = vpop.f32.mrb[21].mxu1 }
 0x1dc   :  { %v619_v28 = vmax.f32 %v453_v23, 0.0 }
 0x1dd   :  { %v620_v30 = vmax.f32 %v455_v26, 0.0  ;;  %v624_v31 = vmax.f32 %v583_v4, 0.0  ;;  %v458_v32 = vpop.f32.mrb[20].mxu0 }
 0x1de   :  { %652 = vst [vmem:[%s1119_s5 + $0x90] sm:$0xff] %v619_v28  ;;  %v459_v33 = vadd.f32 %v458_v32, %v299_v19  ;;  %v460_v34 = vpop.f32.mrb[21].mxu0  ;;  %v587_v35 = vpop.f32.mrb[22].mxu1 }
 0x1df   :  { %653 = vst [vmem:[%s1119_s5 + $0x98] sm:$0xff] %v620_v30  ;;  %657 = vst [vmem:[%s1119_s5 + $0xb8] sm:$0xff] %v624_v31  ;;  %v461_v36 = vadd.f32 %v460_v34, %v299_v19  ;;  %v588_v37 = vadd.f32 %v587_v35, %v304_v29  ;;  %v766_v38 = vpop.f32.mrb[23].mxu1 }
 0x1e0   :  { %v622_v39 = vmax.f32 %v459_v33, 0.0 }
 0x1e1   :  { %v623_v41 = vmax.f32 %v461_v36, 0.0  ;;  %v627_v42 = vmax.f32 %v588_v37, 0.0  ;;  %v464_v43 = vpop.f32.mrb[22].mxu0 }
 0x1e2   :  { %655 = vst [vmem:[%s1119_s5 + $0xa8] sm:$0xff] %v622_v39  ;;  %v465_v44 = vadd.f32 %v464_v43, %v304_v29  ;;  %v466_v45 = vpop.f32.mrb[23].mxu0  ;;  %v592_v46 = vpop.f32.mrb[24].mxu1 }
 0x1e3   :  { %656 = vst [vmem:[%s1119_s5 + $0xb0] sm:$0xff] %v623_v41  ;;  %660 = vst [vmem:[%s1119_s5 + $0xd0] sm:$0xff] %v627_v42  ;;  %v467_v47 = vadd.f32 %v466_v45, %v304_v29  ;;  %v593_v48 = vadd.f32 %v592_v46, %v309_v40  ;;  %v769_v49 = vpop.f32.mrb[25].mxu1 }
 0x1e4   :  { %v625_v50 = vmax.f32 %v465_v44, 0.0 }
 0x1e5   :  { %v626_v52 = vmax.f32 %v467_v47, 0.0  ;;  %v630_v53 = vmax.f32 %v593_v48, 0.0  ;;  %v470_v54 = vpop.f32.mrb[24].mxu0 }
 0x1e6   :  { %658 = vst [vmem:[%s1119_s5 + $0xc0] sm:$0xff] %v625_v50  ;;  %v471_v55 = vadd.f32 %v470_v54, %v309_v40  ;;  %v472_v56 = vpop.f32.mrb[25].mxu0  ;;  %v597_v57 = vpop.f32.mrb[26].mxu1 }
 0x1e7   :  { %659 = vst [vmem:[%s1119_s5 + $0xc8] sm:$0xff] %v626_v52  ;;  %663 = vst [vmem:[%s1119_s5 + $0xe8] sm:$0xff] %v630_v53  ;;  %v473_v58 = vadd.f32 %v472_v56, %v309_v40  ;;  %v598_v59 = vadd.f32 %v597_v57, %v314_v51  ;;  %v772_v60 = vpop.f32.mrb[27].mxu1 }
 0x1e8   :  { %v628_v61 = vmax.f32 %v471_v55, 0.0 }
 0x1e9   :  { %v629_v62 = vmax.f32 %v473_v58, 0.0  ;;  %v633_v63 = vmax.f32 %v598_v59, 0.0  ;;  %v476_v0 = vpop.f32.mrb[26].mxu0 }
 0x1ea   :  { %661 = vst [vmem:[%s1119_s5 + $0xd8] sm:$0xff] %v628_v61  ;;  %v477_v1 = vadd.f32 %v476_v0, %v314_v51  ;;  %v478_v2 = vpop.f32.mrb[27].mxu0 }
 0x1eb   :  { %662 = vst [vmem:[%s1119_s5 + $0xe0] sm:$0xff] %v629_v62  ;;  %666 = vst [vmem:[%s1119_s5 + $0x100] sm:$0x1] %v633_v63  ;;  %v479_v3 = vadd.f32 %v478_v2, %v314_v51 }
 0x1ec   :  { %v631_v5 = vmax.f32 %v477_v1, 0.0 }
 0x1ed   :  { %v632_v6 = vmax.f32 %v479_v3, 0.0 }
 0x1ee   :  { %664 = vst [vmem:[%s1119_s5 + $0xf0] sm:$0x1] %v631_v5 }
 0x1ef   :  { %665 = vst [vmem:[%s1119_s5 + $0xf8] sm:$0x1] %v632_v6 }

</bundles_post_ra>
